<compile_context>
chip_gen: v5e
topology: v5e:2x2
jax: 0.10.0
libtpu: 0.0.40
codegen_flags: <defaults>
</compile_context>

<pallas_src>
import functools

import jax
import jax.numpy as jnp
from jax.experimental import pallas as pl
from jax.experimental.pallas import tpu as pltpu


def _crop_bounds(W, crop_percentage):
    cp = float(crop_percentage)
    cp = 0.0 if cp < 0.0 else (1.0 if cp > 1.0 else cp)
    first = 4 * W
    second = (16 * W * W * cp) ** 0.5
    res = (first + second) / 8
    return int(res), int(W - res)


def _pick_block_rows(C, H, W, in_itemsize, out_itemsize):
    """Rows per block: multiple of 8, ~total_io/8 per block, VMEM-safe."""
    if H <= 8:
        return H
    row_io = C * W * (in_itemsize + out_itemsize)          # logical read+write per h-row
    total_io = H * row_io
    target = min(2 << 20, max(512 << 10, total_io // 8))   # 0.5-2 MiB blocks, >=~8 steps
    th = max(8, min(H, target // max(1, row_io)))
    # Physical VMEM per row (lane padding to 128); keep double-buffered in+out <= ~10 MiB.
    w_pad = -(-W // 128) * 128
    row_phys = C * w_pad * (in_itemsize + out_itemsize)
    th = min(th, max(8, (10 << 20) // (2 * max(1, row_phys))), H)
    th = max(8, (th // 8) * 8)
    # Prefer a multiple-of-8 divisor of H (avoids a ragged last block); otherwise
    # Pallas handles the partial last block (padded reads, masked writes).
    if H % th != 0:
        for cand in range(th, 7, -8):
            if H % cand == 0:
                th = cand
                break
    return min(th, H)


@functools.lru_cache(maxsize=None)
def _build_slice_call(C, H, W, th, in_dtype_name, out_dtype_name):
    in_dtype = jnp.dtype(in_dtype_name)
    out_dtype = jnp.dtype(out_dtype_name)

    def kernel(params_ref, x_ref, o_ref):
        # params_ref: SMEM (2,) int32 = [crop, crop_2] (scalar-prefetched)
        # x_ref: (C, th, W) in input dtype; o_ref: (C, th, W) promoted dtype (f32)
        crop = params_ref[0]
        crop_2 = params_ref[1]
        h0 = pl.program_id(0) * th
        hh = h0 + jax.lax.broadcasted_iota(jnp.int32, (1, th, W), 1)   # image row
        ww = jax.lax.broadcasted_iota(jnp.int32, (1, th, W), 2)        # image col
        row_keep = (hh >= crop_2) & (hh < crop)
        col_keep = (ww >= crop_2) & jnp.logical_not((ww >= crop) & (ww < H))
        m = jnp.where(row_keep & col_keep, 1.0, 0.0).astype(out_dtype)
        x = x_ref[...].astype(out_dtype)                    # in-vreg cast (free on VPU)
        # Multiply form (not select) to exactly mirror torch's img*mask + mask_2.
        o_ref[...] = x * m + (1.0 - m) * 0.5

    grid = (pl.cdiv(H, th),)
    bytes_accessed = C * H * W * (in_dtype.itemsize + out_dtype.itemsize) + 8

    call = pl.pallas_call(
        kernel,
        out_shape=jax.ShapeDtypeStruct((C, H, W), out_dtype),
        grid_spec=pltpu.PrefetchScalarGridSpec(
            num_scalar_prefetch=1,
            grid=grid,
            in_specs=[pl.BlockSpec((C, th, W), lambda i, params: (0, i, 0))],
            out_specs=pl.BlockSpec((C, th, W), lambda i, params: (0, i, 0)),
        ),
        compiler_params=pltpu.CompilerParams(
            dimension_semantics=("parallel",),          # independent H-tiles -> megacore
            vmem_limit_bytes=32 * 1024 * 1024,
        ),
        cost_estimate=pl.CostEstimate(
            flops=3 * C * H * W, transcendentals=0,
            bytes_accessed=int(bytes_accessed)),
    )
    return jax.jit(call)


def slice_crop(img, crop_percentage, *, block_rows=None):
    """Pallas implementation of Slice.forward. img: (C, H, W)."""
    C, H, W = img.shape
    crop, crop_2 = _crop_bounds(W, crop_percentage)
    if crop >= H:                      # PyTorch early return path (original dtype)
        return img

    in_dtype = jnp.dtype(img.dtype)
    out_dtype = jnp.dtype(jnp.promote_types(img.dtype, jnp.float32))

    if block_rows is None:
        th = _pick_block_rows(C, H, W, in_dtype.itemsize, out_dtype.itemsize)
    else:
        th = min(max(1, int(block_rows)), H)
        if th != H:                    # second-to-last block dim: multiple of 8 or full H
            th = max(8, (th // 8) * 8)
            if th > H:
                th = H

    call = _build_slice_call(C, H, W, th, in_dtype.name, out_dtype.name)
    params = jnp.array([crop, crop_2], dtype=jnp.int32)
    return call(params, img)


def slice_ref(img, crop_percentage):
    """Pure-JAX transcription of the PyTorch forward, for correctness checks."""
    C, H, W = img.shape
    crop, crop_2 = _crop_bounds(W, crop_percentage)
    if crop >= H:
        return img
    mask = jnp.ones((H, W), dtype=jnp.float32)
    mask = mask.at[crop:H, :].set(0.0)     # index_fill_(0, h, 0)
    mask = mask.at[:crop_2, :].set(0.0)    # index_fill_(0, h_2, 0)
    mask = mask.at[:, :crop_2].set(0.0)    # index_fill_(1, h_2, 0)
    mask = mask.at[:, crop:H].set(0.0)     # index_fill_(1, h, 0)
    mask_2 = jnp.where(mask == 1.0, 0.0, 0.5)
    x = img.astype(jnp.promote_types(img.dtype, jnp.float32))
    return x * mask + mask_2


if __name__ == "__main__":
    key = jax.random.PRNGKey(0)
    C, H, W = 4, 16, 16
    img = jax.random.normal(key, (C, H, W), dtype=jnp.float32)

    # cp=0.25 -> res=12, crop=12, crop_2=4: keep the 8x8 centre, 0.5 border.
    crop_percentage = 0.25
    out = jax.block_until_ready(slice_crop(img, crop_percentage))
    ref = slice_ref(img, crop_percentage)
    assert out.shape == img.shape and out.dtype == ref.dtype
    assert jnp.allclose(out, ref, atol=1e-6), "mismatch vs reference"

    # Multi-block grid along H (grid of 2 tiles).
    out_tiled = jax.block_until_ready(slice_crop(img, crop_percentage, block_rows=8))
    assert jnp.allclose(out_tiled, ref, atol=1e-6), "tiled mismatch vs reference"

    # Early-return path: crop >= H -> output identical to the input (same dtype).
    out_full = jax.block_until_ready(slice_crop(img, 1.0))
    assert out_full.dtype == img.dtype and jnp.allclose(out_full, img)

    # Rectangular image (H != W), default tiling and a ragged last block.
    img2 = jax.random.normal(jax.random.PRNGKey(1), (3, 24, 32), dtype=jnp.float32)
    ref2 = slice_ref(img2, 0.04)
    out2 = jax.block_until_ready(slice_crop(img2, 0.04))
    assert jnp.allclose(out2, ref2, atol=1e-6)
    out2_ragged = jax.block_until_ready(slice_crop(img2, 0.04, block_rows=16))
    assert jnp.allclose(out2_ragged, ref2, atol=1e-6)

    # bf16 input: cast happens in-kernel, output promoted to float32.
    img3 = img.astype(jnp.bfloat16)
    out3 = jax.block_until_ready(slice_crop(img3, crop_percentage))
    ref3 = slice_ref(img3, crop_percentage)
    assert out3.dtype == jnp.float32
    assert jnp.allclose(out3, ref3, atol=1e-2)

    print("KERNEL_OK")
</pallas_src>

<mosaic_0001>
module attributes {stable_mosaic.version = 11 : i64} {
  func.func @kernel(%arg0: i32, %arg1: memref<2xi32, #tpu.memory_space<smem>>, %arg2: memref<4x16x16xf32, #tpu.memory_space<vmem>>, %arg3: memref<4x16x16xf32, #tpu.memory_space<vmem>>) attributes {dimension_semantics = [#tpu.dimension_semantics<parallel>], iteration_bounds = array<i64: 1>, scalar_prefetch = 1 : i64, scratch_operands = 0 : i64, tpu.core_type = #tpu.core_type<tc>, window_params = [{transform_indices = @transform_0, window_bounds = array<i64: 4, 16, 16>}, {transform_indices = @transform_1, window_bounds = array<i64: 4, 16, 16>}]} {
    %c0 = arith.constant 0 : index
    %0 = memref.load %arg1[%c0] : memref<2xi32, #tpu.memory_space<smem>>
    %c1 = arith.constant 1 : index
    %1 = memref.load %arg1[%c1] : memref<2xi32, #tpu.memory_space<smem>>
    %c16_i32 = arith.constant 16 : i32
    %2 = arith.muli %arg0, %c16_i32 : i32
    %3 = tpu.iota {dimensions = array<i32: 1>} : vector<1x16x16xi32>
    %4 = vector.broadcast %2 : i32 to vector<1x16x16xi32>
    %5 = arith.addi %4, %3 : vector<1x16x16xi32>
    %6 = tpu.iota {dimensions = array<i32: 2>} : vector<1x16x16xi32>
    %7 = vector.broadcast %1 : i32 to vector<1x16x16xi32>
    %8 = arith.cmpi sge, %5, %7 : vector<1x16x16xi32>
    %9 = vector.broadcast %0 : i32 to vector<1x16x16xi32>
    %10 = arith.cmpi slt, %5, %9 : vector<1x16x16xi32>
    %11 = arith.andi %8, %10 : vector<1x16x16xi1>
    %12 = vector.broadcast %1 : i32 to vector<1x16x16xi32>
    %13 = arith.cmpi sge, %6, %12 : vector<1x16x16xi32>
    %14 = vector.broadcast %0 : i32 to vector<1x16x16xi32>
    %15 = arith.cmpi sge, %6, %14 : vector<1x16x16xi32>
    %c16_i32_0 = arith.constant 16 : i32
    %16 = vector.broadcast %c16_i32_0 : i32 to vector<1x16x16xi32>
    %17 = arith.cmpi slt, %6, %16 : vector<1x16x16xi32>
    %18 = arith.andi %15, %17 : vector<1x16x16xi1>
    %cst = arith.constant dense<true> : vector<1x16x16xi1>
    %19 = arith.xori %18, %cst : vector<1x16x16xi1>
    %20 = arith.andi %13, %19 : vector<1x16x16xi1>
    %21 = arith.andi %11, %20 : vector<1x16x16xi1>
    %cst_1 = arith.constant 1.000000e+00 : f32
    %cst_2 = arith.constant 0.000000e+00 : f32
    %22 = vector.broadcast %cst_1 : f32 to vector<1x16x16xf32>
    %23 = vector.broadcast %cst_2 : f32 to vector<1x16x16xf32>
    %24 = arith.select %21, %22, %23 : vector<1x16x16xi1>, vector<1x16x16xf32>
    %c0_3 = arith.constant 0 : index
    %c0_4 = arith.constant 0 : index
    %c0_5 = arith.constant 0 : index
    %25 = vector.load %arg2[%c0_3, %c0_4, %c0_5] : memref<4x16x16xf32, #tpu.memory_space<vmem>>, vector<4x16x16xf32>
    %26 = vector.broadcast %24 : vector<1x16x16xf32> to vector<4x16x16xf32>
    %27 = arith.mulf %25, %26 : vector<4x16x16xf32>
    %cst_6 = arith.constant 1.000000e+00 : f32
    %28 = vector.broadcast %cst_6 : f32 to vector<1x16x16xf32>
    %29 = arith.subf %28, %24 : vector<1x16x16xf32>
    %cst_7 = arith.constant 5.000000e-01 : f32
    %30 = vector.broadcast %cst_7 : f32 to vector<1x16x16xf32>
    %31 = arith.mulf %29, %30 : vector<1x16x16xf32>
    %32 = vector.broadcast %31 : vector<1x16x16xf32> to vector<4x16x16xf32>
    %33 = arith.addf %27, %32 : vector<4x16x16xf32>
    %c0_8 = arith.constant 0 : index
    %c0_9 = arith.constant 0 : index
    %c0_10 = arith.constant 0 : index
    %34 = vector.load %arg3[%c0_8, %c0_9, %c0_10] : memref<4x16x16xf32, #tpu.memory_space<vmem>>, vector<4x16x16xf32>
    tpu.vector_store %arg3[%c0_8, %c0_9, %c0_10], %33 {strides = array<i32>} : memref<4x16x16xf32, #tpu.memory_space<vmem>>, vector<4x16x16xf32>,
    return
  }
  func.func @transform_0(%arg0: i32, %arg1: memref<2xi32, #tpu.memory_space<smem>>) -> (i32, i32, i32) {
    %c0_i32 = arith.constant 0 : i32
    %c0_i32_0 = arith.constant 0 : i32
    %c0_i32_1 = arith.constant 0 : i32
    return %c0_i32, %arg0, %c0_i32_0 : i32, i32, i32
  }
  func.func @transform_1(%arg0: i32, %arg1: memref<2xi32, #tpu.memory_space<smem>>) -> (i32, i32, i32) {
    %c0_i32 = arith.constant 0 : i32
    %c0_i32_0 = arith.constant 0 : i32
    %c0_i32_1 = arith.constant 0 : i32
    return %c0_i32, %arg0, %c0_i32_0 : i32, i32, i32
  }
}

</mosaic_0001>

<bundles_post_ra>
// kernel: tpu_custom_call.1
= control target key start
LH: loop header
LB: loop body
LE: loop exit
PB: predicated region body
PF: predicated region fallthrough
CT: control target
= control target key end

     0   :  { %s193_s12 = smov [#allocation3]   ;;  %s246_s0 = inlined_call_operand.hbm [shape: s32[2], index: 0, kind: input, shape index: {}]   ;;  %s247_s1 = inlined_call_operand.hbm [shape: f32[4,16,16], index: 1, kind: input, shape index: {}]   ;;  %s248_s2 = inlined_call_operand.hbm [shape: f32[4,16,16], index: 2, kind: output, shape index: {}]  }
   0x1   :  { %s8_s11 = sshll.u32 %s246_s0, 4  ;;  %s9_s11 = int_to_ptr.hbm [resolvable:$true] %s8_s11 }
   0x2   :  { %11 = dma.hbm_to_smem %s9_s11, 16, %s193_s12, [#allocation2] }
   0x3   :  { %187 = dma.done.wait [#allocation2], 16 }
   0x4   :  { %188 = vsyncadd [#allocation2], 4294967280 }
   0x5   :  { %14 = sfence }
   0x6   :  { %15 = vsyncpa [#allocation5], 0 }
   0x7   :  { %16 = vsyncpa [#allocation6], 0  ;;  %s21_s15 = sshll.u32 %s247_s1, 4  ;;  %s194_s16 = smov [#allocation4]   ;;  %s22_s15 = int_to_ptr.hbm [resolvable:$true] %s21_s15 }
   0x8   :  { %s23_s17 = sshll.u32 %s194_s16, 4  ;;  %s195_s18 = smov 128   ;;  %s24_s17 = int_to_ptr.vmem [resolvable:$true] %s23_s17 }
   0x9   :  { %s196_s19 = smov 8  }
   0xa   :  { %29 = dma.hbm_to_vmem [thread:$0]  %s22_s15, 1024, %s24_s17, [#allocation5], %s195_s18, %s195_s18, %s196_s19  }
   0xb   :  { %189 = dma.done.wait [#allocation5], 1024  }
   0xc   :  { %190 = vsyncadd [#allocation5], 4294966272  ;;  %v37_v0 = vlaneseq  ;;  %s34_s0 = sld [smem:[#allocation3]]  ;;  %vm197_vm7 = vmmov 1   ;;  %v63_v7 = vld [vmem:[#allocation4] sm:$0xff]  ;;  %v65_v8 = vld [vmem:[#allocation4 + $0x10] sm:$0xff] }
   0xd   :  { %s119_s20 = sld [smem:[#allocation3 + $0x1]]  ;;  %v67_v9 = vld [vmem:[#allocation4 + $0x20] sm:$0xff]  ;;  %v198_v10 = vmov 0.0   ;;  %v64_v12 = vld [vmem:[#allocation4 + $0x8] sm:$0xff]  ;;  %v66_v13 = vld [vmem:[#allocation4 + $0x18] sm:$0xff]  ;;  %vm91_vm15 = vcmask 130048  }
   0xe   :  { %v44_v1 = vand.u32 127, %v37_v0  ;;  %v38_v2 = vshrl.u32 %v37_v0, 7  ;;  %v68_v17 = vld [vmem:[#allocation4 + $0x28] sm:$0xff]  ;;  %v69_v20 = vld [vmem:[#allocation4 + $0x30] sm:$0xff]  ;;  %v70_v25 = vld [vmem:[#allocation4 + $0x38] sm:$0xff]  ;;  %s199_s1 = smov [#allocation7]  }
   0xf   :  { %s104_s21 = sshll.u32 %s199_s1, 4  ;;  %s106_s24 = sshll.u32 %s248_s2, 4  ;;  %s105_s21 = int_to_ptr.vmem [resolvable:$true] %s104_s21  ;;  %s107_s24 = int_to_ptr.hbm [resolvable:$true] %s106_s24 }
  0x10   :  { %vm55_vm0 = vcmp.lt.s32.totalorder %v44_v1, 16  ;;  %v39_v4 = vadd.s32 8, %v38_v2 }
  0x12   :  { %v48_v3 = vstv %s34_s0 }
  0x13   :  { %v45_v5 = vstv %s119_s20  ;;  %vm49_vm1 = vcmp.lt.s32.totalorder %v38_v2, %v48_v3  ;;  %vm54_vm2 = vcmp.ge.s32.totalorder %v44_v1, %v48_v3  ;;  %vm50_vm10 = vcmp.lt.s32.totalorder %v39_v4, %v48_v3 }
  0x14   :  { %vm46_vm3 = vcmp.ge.s32.totalorder %v38_v2, %v45_v5  ;;  %vm53_vm4 = vcmp.ge.s32.totalorder %v44_v1, %v45_v5  ;;  %vm56_vm5 = vmand %vm54_vm2, %vm55_vm0  ;;  %vm47_vm9 = vcmp.ge.s32.totalorder %v39_v4, %v45_v5 }
  0x15   :  { %vm51_vm6 = vmand %vm46_vm3, %vm49_vm1 }
  0x16   :  { %vm57_vm8 = vmxor %vm56_vm5, %vm197_vm7 }
  0x17   :  { %vm224_vm11 = vmand %vm53_vm4, %vm57_vm8 }
  0x18   :  { %vm59_vm12 = vmand %vm51_vm6, %vm224_vm11 }
  0x19   :  { %v61_v11 = vsel %vm59_vm12, 1.0, %v198_v10  ;;  %vm52_vm13 = vmand %vm47_vm9, %vm50_vm10 }
  0x1a   :  { %v71_v14 = vmul.f32 %v63_v7, %v61_v11  ;;  %v79_v15 = vsub.f32 1.0, %v61_v11  ;;  %vm60_vm14 = vmand %vm52_vm13, %vm224_vm11  ;;  %v73_v16 = vmul.f32 %v65_v8, %v61_v11  ;;  %v75_v19 = vmul.f32 %v67_v9, %v61_v11 }
  0x1b   :  { %v62_v18 = vsel %vm60_vm14, 1.0, %v198_v10  ;;  %v77_v30 = vmul.f32 %v69_v20, %v61_v11 }
  0x1c   :  { %v81_v21 = vmul.f32 0.5, %v79_v15  ;;  %v72_v22 = vmul.f32 %v64_v12, %v62_v18  ;;  %v80_v23 = vsub.f32 1.0, %v62_v18  ;;  %v74_v24 = vmul.f32 %v66_v13, %v62_v18 }
  0x1d   :  { %v76_v26 = vmul.f32 %v68_v17, %v62_v18  ;;  %v78_v31 = vmul.f32 %v70_v25, %v62_v18 }
  0x1e   :  { %v83_v27 = vadd.f32 %v81_v21, %v71_v14  ;;  %v82_v28 = vmul.f32 0.5, %v80_v23  ;;  %v85_v29 = vadd.f32 %v81_v21, %v73_v16  ;;  %v87_v34 = vadd.f32 %v81_v21, %v75_v19 }
  0x1f   :  { %v89_v36 = vadd.f32 %v81_v21, %v77_v30 }
  0x20   :  { %92 = vst.msk [vmem:[#allocation7] sm:$0xff] %vm91_vm15, %v83_v27  ;;  %v84_v32 = vadd.f32 %v82_v28, %v72_v22  ;;  %v86_v33 = vadd.f32 %v82_v28, %v74_v24  ;;  %v88_v35 = vadd.f32 %v82_v28, %v76_v26  ;;  %v90_v37 = vadd.f32 %v82_v28, %v78_v31 }
  0x21   :  { %94 = vst.msk [vmem:[#allocation7 + $0x10] sm:$0xff] %vm91_vm15, %v85_v29 }
  0x22   :  { %93 = vst.msk [vmem:[#allocation7 + $0x8] sm:$0xff] %vm91_vm15, %v84_v32 }
  0x23   :  { %95 = vst.msk [vmem:[#allocation7 + $0x18] sm:$0xff] %vm91_vm15, %v86_v33 }
  0x24   :  { %96 = vst.msk [vmem:[#allocation7 + $0x20] sm:$0xff] %vm91_vm15, %v87_v34 }
  0x25   :  { %97 = vst.msk [vmem:[#allocation7 + $0x28] sm:$0xff] %vm91_vm15, %v88_v35 }
  0x26   :  { %98 = vst.msk [vmem:[#allocation7 + $0x30] sm:$0xff] %vm91_vm15, %v89_v36 }
  0x27   :  { %99 = vst.msk [vmem:[#allocation7 + $0x38] sm:$0xff] %vm91_vm15, %v90_v37 }
  0x28   :  { %112 = dma.vmem_to_hbm [thread:$0]  %s105_s21, 1024, %s107_s24, [#allocation6], %s195_s18, %s195_s18, %s196_s19  }
  0x29   :  { %191 = dma.done.wait [#allocation6], 1024  }
  0x2a   :  { %192 = vsyncadd [#allocation6], 4294966272 }
  0x2b   :  { %117 = vsyncpa [#allocation5], 1 }
  0x2c   :  { %118 = vsyncpa [#allocation6], 1 }

</bundles_post_ra>
